<compile_context>
chip_gen: v6e
topology: v6e:2x2x1
jax: 0.10.0
libtpu: 0.0.40
codegen_flags: <defaults>
</compile_context>

<pallas_src>
import functools

import jax
import jax.numpy as jnp
from jax.experimental import pallas as pl
from jax.experimental.pallas import tpu as pltpu


def _vmem_capacity_bytes():
    try:
        return int(pltpu.get_tpu_info().vmem_capacity_bytes)
    except Exception:
        return 64 * 1024 * 1024  # conservative fallback (v7x per-TC VMEM)


def _pick_row_tile(n, max_tile):
    for tm in (1024, 512, 256, 128, 64, 32, 16, 8):
        if tm <= max_tile and n % tm == 0:
            return tm
    return n


def _graphsage_fused_kernel(a_ref, p1_ref, r1b_ref, dinv_ref, wl2_ref, wr2_ref,
                            b2_ref, o_ref, h_ref, *, tm, a_resident):
    # Grid = (stage, row_tile); stage is the OUTER (slow) axis so every stage-0
    # row tile finishes (h fully written to scratch) before stage 1 starts.
    stage = pl.program_id(0)
    i = pl.program_id(1)
    row0 = pl.multiple_of(i * tm, tm)

    # Resident A: slice the row strip out of the VMEM-resident full matrix.
    a_tile = a_ref[pl.ds(row0, tm), :] if a_resident else a_ref[...]

    @pl.when(stage == 0)
    def _layer1():
        # mean_agg(x) @ Wl1^T == deg_inv * (A_counts @ (x @ Wl1^T)) by linearity.
        # Projection hoisted to the wrapper; normalization is an fp32 row scale.
        agg = jnp.dot(a_tile, p1_ref[...], preferred_element_type=jnp.float32)
        h = jnp.maximum(dinv_ref[...] * agg + r1b_ref[...], 0.0)  # fp32 epilogue
        h_ref[pl.ds(row0, tm), :] = h.astype(h_ref.dtype)

    @pl.when(stage == 1)
    def _layer2():
        # agg2 = mean_agg(h) for this row tile (fp32 accumulation + fp32 scale).
        agg2 = dinv_ref[...] * jnp.dot(
            a_tile, h_ref[...], preferred_element_type=jnp.float32)
        h_i = h_ref[pl.ds(row0, tm), :]
        out = (
            jnp.dot(agg2.astype(wl2_ref.dtype), wl2_ref[...],
                    preferred_element_type=jnp.float32)
            + jnp.dot(h_i, wr2_ref[...], preferred_element_type=jnp.float32)
            + b2_ref[...]
        )
        # f_out=16 -> masked lane stores; negligible at this size.
        o_ref[...] = out.astype(o_ref.dtype)


def build_adjacency(edge_index, num_nodes):
    """Unnormalized edge counts (PyG mean: duplicates counted) + fp32 1/deg."""
    src = edge_index[0]
    dst = edge_index[1]
    counts = jnp.zeros((num_nodes, num_nodes), jnp.float32).at[dst, src].add(1.0)
    deg = jnp.maximum(jnp.sum(counts, axis=1, keepdims=True), 1.0)  # isolated -> 0 agg
    return counts, (1.0 / deg).astype(jnp.float32)


def graphsage_forward(x, edge_index, params, *, compute_dtype=jnp.bfloat16):
    n, f_in = x.shape
    hidden = params["w_l1"].shape[0]
    f_out = params["w_l2"].shape[0]

    counts, deg_inv = build_adjacency(edge_index, n)
    a = counts.astype(compute_dtype)  # small integer counts are exact in bf16

    # Hoisted layer-1 input projections (tiny N x f_in x hidden work): removes
    # the in-kernel concatenate and keeps the root path + bias in fp32.
    p1 = jnp.dot(x, params["w_l1"].T).astype(compute_dtype)                  # (N, hidden)
    r1b = (jnp.dot(x, params["w_r1"].T) + params["b_l1"]).astype(jnp.float32)  # (N, hidden)

    wl2t = params["w_l2"].T.astype(compute_dtype)   # (hidden, f_out)
    wr2t = params["w_r2"].T.astype(compute_dtype)   # (hidden, f_out)
    b2 = params["b_l2"].reshape(1, f_out).astype(jnp.float32)

    # Generation-aware VMEM budget (v5e/v6e: 128 MiB, v7x: 64 MiB physical).
    vmem_limit = min(int(_vmem_capacity_bytes() * 0.75), 100 * 1024 * 1024)

    a_item = jnp.dtype(compute_dtype).itemsize
    a_bytes = n * n * a_item
    # Keep A fully resident in VMEM when it comfortably fits -> DMA'd exactly once.
    a_resident = a_bytes <= vmem_limit // 3

    if a_resident:
        tm = _pick_row_tile(n, n)
        a_spec = pl.BlockSpec((n, n), lambda s, i: (0, 0))
    else:
        # Double-buffered (tm, N) A blocks must stay well inside the budget.
        max_tile = max(8, (vmem_limit // 2) // (2 * n * a_item))
        tm = _pick_row_tile(n, max_tile)
        a_spec = pl.BlockSpec((tm, n), lambda s, i: (i, 0))

    n_tiles = n // tm
    kernel = functools.partial(_graphsage_fused_kernel, tm=tm, a_resident=a_resident)

    return pl.pallas_call(
        kernel,
        out_shape=jax.ShapeDtypeStruct((n, f_out), jnp.float32),
        grid_spec=pltpu.PrefetchScalarGridSpec(
            num_scalar_prefetch=0,
            grid=(2, n_tiles),                                    # (stage, row tile)
            in_specs=[
                a_spec,                                              # A (counts)
                pl.BlockSpec((n, hidden), lambda s, i: (0, 0)),      # P1 = x @ Wl1^T
                pl.BlockSpec((tm, hidden), lambda s, i: (i, 0)),     # R1 + b1 (fp32)
                pl.BlockSpec((tm, 1), lambda s, i: (i, 0)),          # deg_inv (fp32)
                pl.BlockSpec((hidden, f_out), lambda s, i: (0, 0)),  # Wl2^T
                pl.BlockSpec((hidden, f_out), lambda s, i: (0, 0)),  # Wr2^T
                pl.BlockSpec((1, f_out), lambda s, i: (0, 0)),       # b2
            ],
            # Stage 0 maps every row tile to output block 0 -> no per-tile
            # writebacks of uninitialized VMEM; stage 1 writes each block once.
            out_specs=pl.BlockSpec((tm, f_out), lambda s, i: (s * i, 0)),
            scratch_shapes=[
                pltpu.VMEM((n, hidden), compute_dtype),   # hidden activations h
            ],
        ),
        compiler_params=pltpu.CompilerParams(
            # Stage 1 reads scratch written across ALL stage-0 row tiles, so both
            # grid axes must run sequentially on one core.
            dimension_semantics=("arbitrary", "arbitrary"),
            vmem_limit_bytes=vmem_limit,
        ),
    )(a, p1, r1b, deg_inv, wl2t, wr2t, b2)


def reference_forward(x, edge_index, params):
    """Pure fp32 JAX reference matching the PyTorch module."""
    n = x.shape[0]
    counts, deg_inv = build_adjacency(edge_index, n)
    a_norm = counts * deg_inv
    h = jax.nn.relu(a_norm @ (x @ params["w_l1"].T) + x @ params["w_r1"].T
                    + params["b_l1"])
    return (a_norm @ (h @ params["w_l2"].T) + h @ params["w_r2"].T
            + params["b_l2"])


def init_params(key, input_dim, hidden_dim, output_dim):
    ks = jax.random.split(key, 6)
    scale1 = 1.0 / jnp.sqrt(jnp.float32(input_dim))
    scale2 = 1.0 / jnp.sqrt(jnp.float32(hidden_dim))
    return {
        "w_l1": jax.random.uniform(ks[0], (hidden_dim, input_dim), jnp.float32, -scale1, scale1),
        "w_r1": jax.random.uniform(ks[1], (hidden_dim, input_dim), jnp.float32, -scale1, scale1),
        "b_l1": jax.random.uniform(ks[2], (hidden_dim,), jnp.float32, -scale1, scale1),
        "w_l2": jax.random.uniform(ks[3], (output_dim, hidden_dim), jnp.float32, -scale2, scale2),
        "w_r2": jax.random.uniform(ks[4], (output_dim, hidden_dim), jnp.float32, -scale2, scale2),
        "b_l2": jax.random.uniform(ks[5], (output_dim,), jnp.float32, -scale2, scale2),
    }


if __name__ == "__main__":
    NUM_NODES = 128
    NUM_EDGES = 512
    INPUT_DIM = 32
    HIDDEN_DIM = 64
    OUTPUT_DIM = 16

    key = jax.random.PRNGKey(0)
    k_x, k_e, k_p = jax.random.split(key, 3)

    x = jax.random.normal(k_x, (NUM_NODES, INPUT_DIM), jnp.float32)
    edge_index = jax.random.randint(k_e, (2, NUM_EDGES), 0, NUM_NODES, jnp.int32)
    params = init_params(k_p, INPUT_DIM, HIDDEN_DIM, OUTPUT_DIM)

    out = jax.jit(graphsage_forward)(x, edge_index, params)
    jax.block_until_ready(out)
    assert out.shape == (NUM_NODES, OUTPUT_DIM)

    ref = reference_forward(x, edge_index, params)
    assert jnp.allclose(out, ref, rtol=5e-2, atol=5e-2), (
        float(jnp.max(jnp.abs(out - ref))))
    print("KERNEL_OK")
</pallas_src>

<mosaic_0001>
module attributes {stable_mosaic.version = 11 : i64} {
  func.func private @main(%arg0: i32) attributes {dimension_semantics = [#tpu.dimension_semantics<core_parallel>], iteration_bounds = array<i64: 2>, tpu.core_type = #tpu.core_type<sc_scalar_subcore>, window_params = []} {
    return
  }
}

module attributes {stable_mosaic.version = 11 : i64} {
  func.func private @main(%arg0: i32) attributes {dimension_semantics = [#tpu.dimension_semantics<core_parallel>], iteration_bounds = array<i64: 2>, tpu.core_type = #tpu.core_type<sc_scalar_subcore>, window_params = []} {
    return
  }
}

module attributes {stable_mosaic.version = 11 : i64} {
  func.func @_graphsage_fused_kernel(%arg0: i32, %arg1: i32, %arg2: memref<128x128xbf16, #tpu.memory_space<vmem>>, %arg3: memref<128x64xbf16, #tpu.memory_space<vmem>>, %arg4: memref<128x64xf32, #tpu.memory_space<vmem>>, %arg5: memref<128x1xf32, #tpu.memory_space<vmem>>, %arg6: memref<64x16xbf16, #tpu.memory_space<vmem>>, %arg7: memref<64x16xbf16, #tpu.memory_space<vmem>>, %arg8: memref<1x16xf32, #tpu.memory_space<vmem>>, %arg9: memref<128x16xf32, #tpu.memory_space<vmem>>, %arg10: memref<128x64xbf16, #tpu.memory_space<vmem>>) attributes {dimension_semantics = [#tpu.dimension_semantics<arbitrary>, #tpu.dimension_semantics<arbitrary>], iteration_bounds = array<i64: 2, 1>, scalar_prefetch = 0 : i64, scratch_operands = 1 : i64, tpu.core_type = #tpu.core_type<tc>, window_params = [{pipeline_mode = #tpu.pipeline_mode<synchronous>, transform_indices = @transform_0, window_bounds = array<i64: 128, 128>}, {pipeline_mode = #tpu.pipeline_mode<synchronous>, transform_indices = @transform_1, window_bounds = array<i64: 128, 64>}, {transform_indices = @transform_2, window_bounds = array<i64: 128, 64>}, {transform_indices = @transform_3, window_bounds = array<i64: 128, 1>}, {pipeline_mode = #tpu.pipeline_mode<synchronous>, transform_indices = @transform_4, window_bounds = array<i64: 64, 16>}, {pipeline_mode = #tpu.pipeline_mode<synchronous>, transform_indices = @transform_5, window_bounds = array<i64: 64, 16>}, {pipeline_mode = #tpu.pipeline_mode<synchronous>, transform_indices = @transform_6, window_bounds = array<i64: 1, 16>}, {transform_indices = @transform_7, window_bounds = array<i64: 128, 16>}]} {
    %c128_i32 = arith.constant 128 : i32
    %0 = arith.muli %arg1, %c128_i32 : i32
    %1 = tpu.assume_multiple %0, 128 : i32
    %2 = arith.index_cast %1 : i32 to index
    %c0 = arith.constant 0 : index
    %3 = vector.load %arg2[%2, %c0] : memref<128x128xbf16, #tpu.memory_space<vmem>>, vector<128x128xbf16>
    %c0_i32 = arith.constant 0 : i32
    %4 = arith.cmpi eq, %arg0, %c0_i32 : i32
    %5 = arith.extui %4 : i1 to i32
    %c0_i32_0 = arith.constant 0 : i32
    %6 = arith.cmpi ne, %5, %c0_i32_0 : i32
    scf.if %6 {
      %c0_2 = arith.constant 0 : index
      %c0_3 = arith.constant 0 : index
      %10 = vector.load %arg3[%c0_2, %c0_3] : memref<128x64xbf16, #tpu.memory_space<vmem>>, vector<128x64xbf16>
      %cst = arith.constant dense<0.000000e+00> : vector<128x64xf32>
      %11 = tpu.matmul %3, %10, %cst {dimension_numbers = #tpu.dot_dimension_numbers<[1], [0], [0], [1], [0, 0, 1, 1], [], []>} : vector<128x128xbf16>, vector<128x64xbf16>, vector<128x64xf32> -> vector<128x64xf32>
      %c0_4 = arith.constant 0 : index
      %c0_5 = arith.constant 0 : index
      %12 = vector.load %arg5[%c0_4, %c0_5] : memref<128x1xf32, #tpu.memory_space<vmem>>, vector<128x1xf32>
      %13 = vector.broadcast %12 : vector<128x1xf32> to vector<128x64xf32>
      %14 = arith.mulf %13, %11 : vector<128x64xf32>
      %c0_6 = arith.constant 0 : index
      %c0_7 = arith.constant 0 : index
      %15 = vector.load %arg4[%c0_6, %c0_7] : memref<128x64xf32, #tpu.memory_space<vmem>>, vector<128x64xf32>
      %16 = arith.addf %14, %15 : vector<128x64xf32>
      %cst_8 = arith.constant 0.000000e+00 : f32
      %17 = vector.broadcast %cst_8 : f32 to vector<128x64xf32>
      %18 = arith.maximumf %16, %17 : vector<128x64xf32>
      %19 = arith.truncf %18 : vector<128x64xf32> to vector<128x64xbf16>
      %20 = arith.index_cast %1 : i32 to index
      %c0_9 = arith.constant 0 : index
      %21 = vector.load %arg10[%20, %c0_9] : memref<128x64xbf16, #tpu.memory_space<vmem>>, vector<128x64xbf16>
      tpu.vector_store %arg10[%20, %c0_9], %19 {strides = array<i32>} : memref<128x64xbf16, #tpu.memory_space<vmem>>, vector<128x64xbf16>,
    } else {
    }
    %c1_i32 = arith.constant 1 : i32
    %7 = arith.cmpi eq, %arg0, %c1_i32 : i32
    %8 = arith.extui %7 : i1 to i32
    %c0_i32_1 = arith.constant 0 : i32
    %9 = arith.cmpi ne, %8, %c0_i32_1 : i32
    scf.if %9 {
      %c0_2 = arith.constant 0 : index
      %c0_3 = arith.constant 0 : index
      %10 = vector.load %arg5[%c0_2, %c0_3] : memref<128x1xf32, #tpu.memory_space<vmem>>, vector<128x1xf32>
      %c0_4 = arith.constant 0 : index
      %c0_5 = arith.constant 0 : index
      %11 = vector.load %arg10[%c0_4, %c0_5] : memref<128x64xbf16, #tpu.memory_space<vmem>>, vector<128x64xbf16>
      %cst = arith.constant dense<0.000000e+00> : vector<128x64xf32>
      %12 = tpu.matmul %3, %11, %cst {dimension_numbers = #tpu.dot_dimension_numbers<[1], [0], [0], [1], [0, 0, 1, 1], [], []>} : vector<128x128xbf16>, vector<128x64xbf16>, vector<128x64xf32> -> vector<128x64xf32>
      %13 = vector.broadcast %10 : vector<128x1xf32> to vector<128x64xf32>
      %14 = arith.mulf %13, %12 : vector<128x64xf32>
      %15 = arith.index_cast %1 : i32 to index
      %c0_6 = arith.constant 0 : index
      %16 = vector.load %arg10[%15, %c0_6] : memref<128x64xbf16, #tpu.memory_space<vmem>>, vector<128x64xbf16>
      %17 = arith.truncf %14 : vector<128x64xf32> to vector<128x64xbf16>
      %c0_7 = arith.constant 0 : index
      %c0_8 = arith.constant 0 : index
      %18 = vector.load %arg6[%c0_7, %c0_8] : memref<64x16xbf16, #tpu.memory_space<vmem>>, vector<64x16xbf16>
      %cst_9 = arith.constant dense<0.000000e+00> : vector<128x16xf32>
      %19 = tpu.matmul %17, %18, %cst_9 {dimension_numbers = #tpu.dot_dimension_numbers<[1], [0], [0], [1], [0, 0, 1, 1], [], []>} : vector<128x64xbf16>, vector<64x16xbf16>, vector<128x16xf32> -> vector<128x16xf32>
      %c0_10 = arith.constant 0 : index
      %c0_11 = arith.constant 0 : index
      %20 = vector.load %arg7[%c0_10, %c0_11] : memref<64x16xbf16, #tpu.memory_space<vmem>>, vector<64x16xbf16>
      %cst_12 = arith.constant dense<0.000000e+00> : vector<128x16xf32>
      %21 = tpu.matmul %16, %20, %cst_12 {dimension_numbers = #tpu.dot_dimension_numbers<[1], [0], [0], [1], [0, 0, 1, 1], [], []>} : vector<128x64xbf16>, vector<64x16xbf16>, vector<128x16xf32> -> vector<128x16xf32>
      %22 = arith.addf %19, %21 : vector<128x16xf32>
      %c0_13 = arith.constant 0 : index
      %c0_14 = arith.constant 0 : index
      %23 = vector.load %arg8[%c0_13, %c0_14] : memref<1x16xf32, #tpu.memory_space<vmem>>, vector<1x16xf32>
      %24 = vector.broadcast %23 : vector<1x16xf32> to vector<128x16xf32>
      %25 = arith.addf %22, %24 : vector<128x16xf32>
      %c0_15 = arith.constant 0 : index
      %c0_16 = arith.constant 0 : index
      %26 = vector.load %arg9[%c0_15, %c0_16] : memref<128x16xf32, #tpu.memory_space<vmem>>, vector<128x16xf32>
      tpu.vector_store %arg9[%c0_15, %c0_16], %25 {strides = array<i32>} : memref<128x16xf32, #tpu.memory_space<vmem>>, vector<128x16xf32>,
    } else {
    }
    return
  }
  func.func @transform_0(%arg0: i32, %arg1: i32) -> (i32, i32) {
    %c0_i32 = arith.constant 0 : i32
    %c0_i32_0 = arith.constant 0 : i32
    %c0_i32_1 = arith.constant 0 : i32
    return %c0_i32, %c0_i32_0 : i32, i32
  }
  func.func @transform_1(%arg0: i32, %arg1: i32) -> (i32, i32) {
    %c0_i32 = arith.constant 0 : i32
    %c0_i32_0 = arith.constant 0 : i32
    %c0_i32_1 = arith.constant 0 : i32
    return %c0_i32, %c0_i32_0 : i32, i32
  }
  func.func @transform_2(%arg0: i32, %arg1: i32) -> (i32, i32) {
    %c0_i32 = arith.constant 0 : i32
    %c0_i32_0 = arith.constant 0 : i32
    return %arg1, %c0_i32 : i32, i32
  }
  func.func @transform_3(%arg0: i32, %arg1: i32) -> (i32, i32) {
    %c0_i32 = arith.constant 0 : i32
    %c0_i32_0 = arith.constant 0 : i32
    return %arg1, %c0_i32 : i32, i32
  }
  func.func @transform_4(%arg0: i32, %arg1: i32) -> (i32, i32) {
    %c0_i32 = arith.constant 0 : i32
    %c0_i32_0 = arith.constant 0 : i32
    %c0_i32_1 = arith.constant 0 : i32
    return %c0_i32, %c0_i32_0 : i32, i32
  }
  func.func @transform_5(%arg0: i32, %arg1: i32) -> (i32, i32) {
    %c0_i32 = arith.constant 0 : i32
    %c0_i32_0 = arith.constant 0 : i32
    %c0_i32_1 = arith.constant 0 : i32
    return %c0_i32, %c0_i32_0 : i32, i32
  }
  func.func @transform_6(%arg0: i32, %arg1: i32) -> (i32, i32) {
    %c0_i32 = arith.constant 0 : i32
    %c0_i32_0 = arith.constant 0 : i32
    %c0_i32_1 = arith.constant 0 : i32
    return %c0_i32, %c0_i32_0 : i32, i32
  }
  func.func @transform_7(%arg0: i32, %arg1: i32) -> (i32, i32) {
    %0 = arith.muli %arg0, %arg1 : i32
    %c0_i32 = arith.constant 0 : i32
    %c0_i32_0 = arith.constant 0 : i32
    return %0, %c0_i32 : i32, i32
  }
}

</mosaic_0001>

<bundles_post_ra>
// kernel: graphsage_forward.1
= control target key start
LH: loop header
LB: loop body
LE: loop exit
PB: predicated region body
PF: predicated region fallthrough
CT: control target
= control target key end

     0   :  { %s2058_s24 = smov 0   ;;  %s2060_s25 = smov 0   ;;  %s2546_s0 = inlined_call_operand.vmem [shape: bf16[128,128], index: 0, kind: input, shape index: {}]   ;;  %s2547_s1 = inlined_call_operand.vmem [shape: bf16[128,64], index: 1, kind: input, shape index: {}]   ;;  %s2548_s2 = inlined_call_operand.vmem [shape: f32[128,64], index: 2, kind: input, shape index: {}]   ;;  %s2549_s3 = inlined_call_operand.vmem [shape: f32[128,1], index: 3, kind: input, shape index: {}]   ;;  %s2550_s4 = inlined_call_operand.vmem [shape: bf16[64,16], index: 4, kind: input, shape index: {}]   ;;  %s2551_s5 = inlined_call_operand.vmem [shape: bf16[64,16], index: 5, kind: input, shape index: {}]   ;;  %s2552_s6 = inlined_call_operand.vmem [shape: f32[1,16], index: 6, kind: input, shape index: {}]   ;;  %s2553_s7 = inlined_call_operand.vmem [shape: f32[128,16], index: 7, kind: output, shape index: {}]  }
   0x1   :  { %s2062_s26 = smov 0  }
   0x2 LB: > { %s29_s27 = sadd.s32 1, %s2010_s25  ;;  %p1634_p0 = scmp.ge.s32.totalorder %s2014_s26, 1  ;;  %s2014_s26 = sphi %s2062_s26, %s17_s26   ;;  %s2010_s25 = sphi %s2060_s25, %s2555_s25   ;;  %s2006_s24 = sphi %s2058_s24, %s2554_s24  }
   0x3   : > { %p31_p1 = scmp.ge.s32.totalorder %s29_s27, 2  ;;  %p263_p2 = scmp.lt.s32.totalorder %s2014_s26, 3 }
   0x5   : > { %s2557_s27 = smov (%p31_p1, %s29_s27), 0  ;;  %p264_p3 = pnand %p1634_p0, %p263_p2 }
   0x6   : > { %p1635_p4 = scmp.ne.s32.totalorder (!%p264_p3), %s2006_s24, 0 }
   0x7   : > { %267 = sbr.rel (%p264_p3) target bundleno = 745 (0x2e9), region = 48 }
   0xc   : > { %v2081_v0 = vld [vmem:[%s2546_s0] sm:$0xf]  ;;  %v2086_v1 = vld [vmem:[%s2546_s0 + $0x4] sm:$0xf]  ;;  %v2091_v2 = vld [vmem:[%s2546_s0 + $0x8] sm:$0xf] }
   0xd   : > { %v2096_v3 = vld [vmem:[%s2546_s0 + $0xc] sm:$0xf]  ;;  %v2101_v4 = vld [vmem:[%s2546_s0 + $0x10] sm:$0xf]  ;;  %v2106_v5 = vld [vmem:[%s2546_s0 + $0x14] sm:$0xf] }
   0xe   : > { %v2111_v6 = vld [vmem:[%s2546_s0 + $0x18] sm:$0xf]  ;;  %v2116_v7 = vld [vmem:[%s2546_s0 + $0x1c] sm:$0xf]  ;;  %v2121_v8 = vld [vmem:[%s2546_s0 + $0x20] sm:$0xf] }
   0xf   : > { %v2126_v9 = vld [vmem:[%s2546_s0 + $0x24] sm:$0xf]  ;;  %v2131_v10 = vld [vmem:[%s2546_s0 + $0x28] sm:$0xf]  ;;  %v2136_v11 = vld [vmem:[%s2546_s0 + $0x2c] sm:$0xf] }
  0x10   : > { %v2141_v12 = vld [vmem:[%s2546_s0 + $0x30] sm:$0xf]  ;;  %v2146_v13 = vld [vmem:[%s2546_s0 + $0x34] sm:$0xf]  ;;  %v2151_v14 = vld [vmem:[%s2546_s0 + $0x38] sm:$0xf] }
  0x11   : > { %v2156_v15 = vld [vmem:[%s2546_s0 + $0x3c] sm:$0xf]  ;;  %346 = sbr.rel (%p1635_p4) target bundleno = 273 (0x111), region = 52 }
  0x16   : > { %v1958_v16 = vld [vmem:[%s2547_s1 + $0x38] sm:$0xff]   ;;  %v1959_v17 = vld [vmem:[%s2547_s1 + $0x30] sm:$0xff]   ;;  %v1636_v18 = vcombine.low %v2081_v0, %v2086_v1  ;;  %v1640_v19 = vcombine.low %v2121_v8, %v2126_v9  ;;  %v1960_v20 = vld [vmem:[%s2547_s1 + $0x28] sm:$0xff]   ;;  %v2016_v21 = vmov 0   ;;  %v1637_v39 = vcombine.low %v2091_v2, %v2096_v3 }
  0x17   : > { %1794 = vmatprep.subr.bf16.mxu0 %v1958_v16  ;;  %1906 = vmatprep.subr.bf16.mxu1 %v1958_v16  ;;  %v1961_v22 = vld [vmem:[%s2547_s1 + $0x20] sm:$0xff]   ;;  %v558_v23 = vld [vmem:[%s2549_s3 + $0x10] sm:$0xff]  ;;  %v559_v25 = vld [vmem:[%s2549_s3 + $0x18] sm:$0xff]  ;;  %v1641_v40 = vcombine.low %v2131_v10, %v2136_v11  ;;  %v1638_v43 = vcombine.low %v2101_v4, %v2106_v5  ;;  %v1642_v44 = vcombine.low %v2141_v12, %v2146_v13  ;;  %vm782_vm0 = vcmask 519168  }
  0x18   : > { %1795 = vmatpush3.bf16.msra.mxu0 %v1958_v16  ;;  %1914 = vmatpush3.bf16.msra.mxu1 %v1958_v16  ;;  %v556_v24 = vld [vmem:[%s2549_s3] sm:$0xff]  ;;  %v557_v26 = vld [vmem:[%s2549_s3 + $0x8] sm:$0xff]  ;;  %v1962_v27 = vld [vmem:[%s2547_s1 + $0x18] sm:$0xff]   ;;  %v1639_v47 = vcombine.low %v2111_v6, %v2116_v7  ;;  %v1643_v48 = vcombine.low %v2151_v14, %v2156_v15 }
  0x19   : > { %1796 = vmatprep.subr.bf16.mxu0 %v1959_v17  ;;  %1907 = vmatprep.subr.bf16.mxu1 %v1959_v17  ;;  %v561_v28 = vld [vmem:[%s2549_s3 + $0x28] sm:$0xff]  ;;  %v560_v29 = vld [vmem:[%s2549_s3 + $0x20] sm:$0xff]  ;;  %v1963_v30 = vld [vmem:[%s2547_s1 + $0x10] sm:$0xff]  }
  0x1a   : > { %1810 = vmatprep.mubr.bf16.mxu0 %v1636_v18  ;;  %1818 = vmatprep.mubr.bf16.mxu1 %v1640_v19  ;;  %v563_v31 = vld [vmem:[%s2549_s3 + $0x38] sm:$0xff]  ;;  %v562_v32 = vld [vmem:[%s2549_s3 + $0x30] sm:$0xff]  ;;  %v1964_v33 = vld [vmem:[%s2547_s1 + $0x8] sm:$0xff]  }
  0x1b   : > { %1957 = vset.pattern.permute.xlu1 %v2016_v21  ;;  %1956 = vset.pattern.permute.xlu0 %v2016_v21  ;;  %v565_v34 = vld [vmem:[%s2549_s3 + $0x48] sm:$0xff]  ;;  %v564_v35 = vld [vmem:[%s2549_s3 + $0x40] sm:$0xff]  ;;  %v567_v37 = vld [vmem:[%s2549_s3 + $0x58] sm:$0xff] }
  0x1c   : > { %1797 = vmatpush3.bf16.msra.mxu0 %v1959_v17  ;;  %1915 = vmatpush3.bf16.msra.mxu1 %v1959_v17  ;;  %v1965_v36 = vld [vmem:[%s2547_s1] sm:$0xff]   ;;  %v566_v38 = vld [vmem:[%s2549_s3 + $0x50] sm:$0xff]  ;;  %v569_v41 = vld [vmem:[%s2549_s3 + $0x68] sm:$0xff] }
  0x1d   : > { %1798 = vmatprep.subr.bf16.mxu0 %v1960_v20  ;;  %1908 = vmatprep.subr.bf16.mxu1 %v1960_v20  ;;  %v568_v42 = vld [vmem:[%s2549_s3 + $0x60] sm:$0xff]  ;;  %v571_v45 = vld [vmem:[%s2549_s3 + $0x78] sm:$0xff]  ;;  %v570_v46 = vld [vmem:[%s2549_s3 + $0x70] sm:$0xff] }
  0x1e   : > { %584 = vperm.xlu1 %1957, %v558_v23   ;;  %574 = vperm.xlu0 %1956, %v556_v24   ;;  %v670_v61 = vld [vmem:[%s2548_s2 + $0x10] sm:$0xff]  ;;  %v668_v21 = vld [vmem:[%s2548_s2] sm:$0xff] }
  0x1f   : > { %v678_v63 = vld [vmem:[%s2548_s2 + $0x50] sm:$0xff]  ;;  %v676_v23 = vld [vmem:[%s2548_s2 + $0x40] sm:$0xff] }
  0x20   : > { %1799 = vmatpush3.bf16.msra.mxu0 %v1960_v20  ;;  %1916 = vmatpush3.bf16.msra.mxu1 %v1960_v20 }
  0x21   : > { %1800 = vmatprep.subr.bf16.mxu0 %v1961_v22  ;;  %1909 = vmatprep.subr.bf16.mxu1 %v1961_v22 }
  0x22   : > { %589 = vperm.xlu1 %1957, %v559_v25   ;;  %579 = vperm.xlu0 %1956, %v557_v26  }
  0x24   : > { %1801 = vmatpush3.bf16.msra.mxu0 %v1961_v22  ;;  %1917 = vmatpush3.bf16.msra.mxu1 %v1961_v22 }
  0x25   : > { %1802 = vmatprep.subr.bf16.mxu0 %v1962_v27  ;;  %1910 = vmatprep.subr.bf16.mxu1 %v1962_v27 }
  0x26   : > { %599 = vperm.xlu1 %1957, %v561_v28   ;;  %594 = vperm.xlu0 %1956, %v560_v29  }
  0x28   : > { %1803 = vmatpush3.bf16.msra.mxu0 %v1962_v27  ;;  %1918 = vmatpush3.bf16.msra.mxu1 %v1962_v27 }
  0x29   : > { %1804 = vmatprep.subr.bf16.mxu0 %v1963_v30  ;;  %1911 = vmatprep.subr.bf16.mxu1 %v1963_v30 }
  0x2a   : > { %609 = vperm.xlu1 %1957, %v563_v31   ;;  %604 = vperm.xlu0 %1956, %v562_v32  }
  0x2c   : > { %1805 = vmatpush3.bf16.msra.mxu0 %v1963_v30  ;;  %1919 = vmatpush3.bf16.msra.mxu1 %v1963_v30 }
  0x2d   : > { %1806 = vmatprep.subr.bf16.mxu0 %v1964_v33  ;;  %1912 = vmatprep.subr.bf16.mxu1 %v1964_v33 }
  0x2e   : > { %619 = vperm.xlu1 %1957, %v565_v34   ;;  %614 = vperm.xlu0 %1956, %v564_v35   ;;  %v671_v34 = vld [vmem:[%s2548_s2 + $0x18] sm:$0xff] }
  0x2f   : > { %v679_v35 = vld [vmem:[%s2548_s2 + $0x58] sm:$0xff] }
  0x30   : > { %1807 = vmatpush3.bf16.msra.mxu0 %v1964_v33  ;;  %1920 = vmatpush3.bf16.msra.mxu1 %v1964_v33 }
  0x31   : > { %1808 = vmatprep.subr.bf16.mxu0 %v1965_v36  ;;  %1913 = vmatprep.subr.bf16.mxu1 %v1965_v36 }
  0x32   : > { %629 = vperm.xlu1 %1957, %v567_v37   ;;  %624 = vperm.xlu0 %1956, %v566_v38  }
  0x34   : > { %1809 = vmatpush3.bf16.msra.mxu0 %v1965_v36  ;;  %1921 = vmatpush3.bf16.msra.mxu1 %v1965_v36 }
  0x36   : > { %639 = vperm.xlu1 %1957, %v569_v41   ;;  %634 = vperm.xlu0 %1956, %v568_v42  }
  0x37   : > { %1811 = vmatmul.mubr.bf16.vlgmr.msra.gmra.mxu0 %v1637_v39  ;;  %1819 = vmatmul.mubr.bf16.vlgmr.msra.gmra.mxu1 %v1641_v40 }
  0x38   : > { %1814 = vmatprep.mubr.bf16.mxu0 %v1638_v43  ;;  %1822 = vmatprep.mubr.bf16.mxu1 %v1642_v44 }
  0x3a   : > { %649 = vperm.xlu1 %1957, %v571_v45   ;;  %644 = vperm.xlu0 %1956, %v570_v46   ;;  %v669_v46 = vld [vmem:[%s2548_s2 + $0x8] sm:$0xff] }
  0x3f   : > { %1815 = vmatmul.mubr.bf16.gmra.mxu0 %v1639_v47  ;;  %1823 = vmatmul.mubr.bf16.gmra.mxu1 %v1643_v48  ;;  %v677_v47 = vld [vmem:[%s2548_s2 + $0x48] sm:$0xff] }
  0x99   : > { %v575_v49 = vpop.permute.xlu0 %574  ;;  %v585_v50 = vpop.permute.xlu1 %584 }
  0x9d   : > { %v580_v51 = vpop.permute.xlu0 %579  ;;  %v590_v52 = vpop.permute.xlu1 %589 }
  0xa1   : > { %v2247_v53 = vpop.permute.xlu0 %594  ;;  %v2249_v54 = vpop.permute.xlu1 %599 }
  0xa5   : > { %v605_v55 = vpop.permute.xlu0 %604  ;;  %v2251_v56 = vpop.permute.xlu1 %609 }
  0xa9   : > { %v615_v57 = vpop.permute.xlu0 %614  ;;  %v620_v58 = vpop.permute.xlu1 %619 }
  0xad   : > { %v625_v59 = vpop.permute.xlu0 %624  ;;  %v630_v16 = vpop.permute.xlu1 %629 }
  0xb1   : > { %v635_v17 = vpop.permute.xlu0 %634  ;;  %v2271_v40 = vpop.permute.xlu1 %639 }
  0xb5   : > { %v645_v41 = vpop.permute.xlu0 %644 }
  0xf7   : > { %v1812_v60 = vpop.f32.mrf.mxu0  ;;  %v1820_v62 = vpop.f32.mrf.mxu1 }
  0xf8   : > { %v654_v18 = vmul.f32 %v1812_v60, %v585_v50  ;;  %v662_v19 = vmul.f32 %v1820_v62, %v625_v59  ;;  %v674_v59 = vld [vmem:[%s2548_s2 + $0x30] sm:$0xff] }
  0xf9   : > { %v493_v20 = vpop.f32.mrf.mxu0  ;;  %v525_v22 = vpop.f32.mrf.mxu1 }
  0xfa   : > { %v686_v24 = vadd.f32 %v670_v61, %v654_v18  ;;  %v694_v25 = vadd.f32 %v678_v63, %v662_v19  ;;  %v652_v26 = vmul.f32 %v575_v49, %v493_v20  ;;  %v660_v27 = vmul.f32 %v615_v57, %v525_v22  ;;  %v682_v61 = vld [vmem:[%s2548_s2 + $0x70] sm:$0xff]  ;;  %v672_v22 = vld [vmem:[%s2548_s2 + $0x20] sm:$0xff] }
  0xfb   : > { %v1813_v28 = vpop.f32.mrf.mxu0  ;;  %v1821_v29 = vpop.f32.mrf.mxu1 }
  0xfc   : > { %v702_v30 = vmax.f32 %v686_v24, 0.0  ;;  %v710_v31 = vmax.f32 %v694_v25, 0.0  ;;  %v684_v32 = vadd.f32 %v668_v21, %v652_v26  ;;  %v692_v33 = vadd.f32 %v676_v23, %v660_v27  ;;  %v680_v24 = vld [vmem:[%s2548_s2 + $0x60] sm:$0xff] }
  0xfd   : > { %v655_v36 = vmul.f32 %v1813_v28, %v590_v52  ;;  %v663_v37 = vmul.f32 %v1821_v29, %v630_v16  ;;  %v496_v38 = vpop.f32.mrf.mxu0  ;;  %v528_v39 = vpop.f32.mrf.mxu1 }
  0xfe   : > { %v1724_v42 = vpack.c.bf16 %v702_v30, %v702_v30  ;;  %v1732_v43 = vpack.c.bf16 %v710_v31, %v710_v31  ;;  %v700_v44 = vmax.f32 %v684_v32, 0.0  ;;  %v708_v45 = vmax.f32 %v692_v33, 0.0 }
  0xff   : > { %v687_v48 = vadd.f32 %v671_v34, %v655_v36  ;;  %v695_v49 = vadd.f32 %v679_v35, %v663_v37  ;;  %v653_v50 = vmul.f32 %v580_v51, %v496_v38  ;;  %v661_v52 = vmul.f32 %v620_v58, %v528_v39  ;;  %v1816_v57 = vpop.f32.mrf.mxu0  ;;  %v1824_v60 = vpop.f32.mrf.mxu1  ;;  %v675_v39 = vld [vmem:[%s2548_s2 + $0x38] sm:$0xff] }
 0x100   : > { %785 = vst.msk [vmem:[#allocation2 + $0x8] sm:$0xf] %vm782_vm0, %v1724_v42  ;;  %793 = vst.msk [vmem:[#allocation2 + $0x28] sm:$0xf] %vm782_vm0, %v1732_v43  ;;  %v1722_v62 = vpack.c.bf16 %v700_v44, %v700_v44  ;;  %v1730_v63 = vpack.c.bf16 %v708_v45, %v708_v45  ;;  %v658_v16 = vmul.f32 %v1816_v57, %v605_v55  ;;  %v650_v34 = vpop.permute.xlu1 %649 }
 0x101   : > { %v666_v18 = vmul.f32 %v1824_v60, %v645_v41  ;;  %v703_v51 = vmax.f32 %v687_v48, 0.0  ;;  %v711_v58 = vmax.f32 %v695_v49, 0.0  ;;  %v685_v19 = vadd.f32 %v669_v46, %v653_v50  ;;  %v509_v21 = vpop.f32.mrf.mxu0  ;;  %v541_v23 = vpop.f32.mrf.mxu1  ;;  %v673_v50 = vld [vmem:[%s2548_s2 + $0x28] sm:$0xff] }
 0x102   : > { %v693_v20 = vadd.f32 %v677_v47, %v661_v52  ;;  %783 = vst.msk [vmem:[#allocation2] sm:$0xf] %vm782_vm0, %v1722_v62  ;;  %791 = vst.msk [vmem:[#allocation2 + $0x20] sm:$0xf] %vm782_vm0, %v1730_v63  ;;  %v690_v55 = vadd.f32 %v674_v59, %v658_v16  ;;  %v656_v26 = vmul.f32 %v2247_v53, %v509_v21  ;;  %v683_v53 = vld [vmem:[%s2548_s2 + $0x78] sm:$0xff]  ;;  %v681_v52 = vld [vmem:[%s2548_s2 + $0x68] sm:$0xff] }
 0x103   : > { %v698_v25 = vadd.f32 %v682_v61, %v666_v18  ;;  %v664_v27 = vmul.f32 %v635_v17, %v541_v23  ;;  %v1725_v28 = vpack.c.bf16 %v703_v51, %v703_v51  ;;  %v1733_v29 = vpack.c.bf16 %v711_v58, %v711_v58  ;;  %v1817_v32 = vpop.f32.mrf.mxu0  ;;  %v1825_v33 = vpop.f32.mrf.mxu1 }
 0x104   : > { %v701_v30 = vmax.f32 %v685_v19, 0.0  ;;  %v709_v31 = vmax.f32 %v693_v20, 0.0  ;;  %v706_v35 = vmax.f32 %v690_v55, 0.0  ;;  %v688_v37 = vadd.f32 %v672_v22, %v656_v26 }
 0x105   : > { %v714_v36 = vmax.f32 %v698_v25, 0.0  ;;  %v696_v38 = vadd.f32 %v680_v24, %v664_v27  ;;  %786 = vst.msk [vmem:[#allocation2 + $0xc] sm:$0xf] %vm782_vm0, %v1725_v28  ;;  %794 = vst.msk [vmem:[#allocation2 + $0x2c] sm:$0xf] %vm782_vm0, %v1733_v29  ;;  %v659_v42 = vmul.f32 %v1817_v32, %v2251_v56  ;;  %v667_v43 = vmul.f32 %v1825_v33, %v650_v34  ;;  %v512_v44 = vpop.f32.mrf.mxu0  ;;  %v544_v45 = vpop.f32.mrf.mxu1 }
 0x106   : > { %v1723_v17 = vpack.c.bf16 %v701_v30, %v701_v30  ;;  %v1731_v41 = vpack.c.bf16 %v709_v31, %v709_v31  ;;  %v1728_v46 = vpack.c.bf16 %v706_v35, %v706_v35  ;;  %v704_v48 = vmax.f32 %v688_v37, 0.0 }
 0x107   : > { %v1736_v47 = vpack.c.bf16 %v714_v36, %v714_v36  ;;  %v712_v49 = vmax.f32 %v696_v38, 0.0  ;;  %v691_v56 = vadd.f32 %v675_v39, %v659_v42  ;;  %v699_v57 = vadd.f32 %v683_v53, %v667_v43 }
 0x108   : > { %784 = vst.msk [vmem:[#allocation2 + $0x4] sm:$0xf] %vm782_vm0, %v1723_v17  ;;  %792 = vst.msk [vmem:[#allocation2 + $0x24] sm:$0xf] %vm782_vm0, %v1731_v41  ;;  %v657_v59 = vmul.f32 %v2249_v54, %v512_v44  ;;  %v665_v60 = vmul.f32 %v2271_v40, %v544_v45  ;;  %v1726_v61 = vpack.c.bf16 %v704_v48, %v704_v48 }
 0x109   : > { %789 = vst.msk [vmem:[#allocation2 + $0x18] sm:$0xf] %vm782_vm0, %v1728_v46  ;;  %797 = vst.msk [vmem:[#allocation2 + $0x38] sm:$0xf] %vm782_vm0, %v1736_v47  ;;  %v1734_v62 = vpack.c.bf16 %v712_v49, %v712_v49  ;;  %v707_v63 = vmax.f32 %v691_v56, 0.0  ;;  %v715_v16 = vmax.f32 %v699_v57, 0.0 }
 0x10a   : > { %v689_v18 = vadd.f32 %v673_v50, %v657_v59  ;;  %v697_v51 = vadd.f32 %v681_v52, %v665_v60  ;;  %787 = vst.msk [vmem:[#allocation2 + $0x10] sm:$0xf] %vm782_vm0, %v1726_v61 }
 0x10b   : > { %795 = vst.msk [vmem:[#allocation2 + $0x30] sm:$0xf] %vm782_vm0, %v1734_v62  ;;  %v1729_v58 = vpack.c.bf16 %v707_v63, %v707_v63  ;;  %v1737_v19 = vpack.c.bf16 %v715_v16, %v715_v16 }
 0x10c   : > { %v705_v20 = vmax.f32 %v689_v18, 0.0  ;;  %v713_v54 = vmax.f32 %v697_v51, 0.0 }
 0x10d   : > { %790 = vst.msk [vmem:[#allocation2 + $0x1c] sm:$0xf] %vm782_vm0, %v1729_v58  ;;  %798 = vst.msk [vmem:[#allocation2 + $0x3c] sm:$0xf] %vm782_vm0, %v1737_v19 }
 0x10e   : > { %v1727_v40 = vpack.c.bf16 %v705_v20, %v705_v20  ;;  %v1735_v21 = vpack.c.bf16 %v713_v54, %v713_v54 }
 0x110   : > { %788 = vst.msk [vmem:[#allocation2 + $0x14] sm:$0xf] %vm782_vm0, %v1727_v40  ;;  %796 = vst.msk [vmem:[#allocation2 + $0x34] sm:$0xf] %vm782_vm0, %v1735_v21 }
 0x111 PF: > { %p1668_p5 = scmp.ne.s32.totalorder %s2006_s24, 1 }
 0x113   : > { %802 = sbr.rel (%p1668_p5) target bundleno = 745 (0x2e9), region = 56 }
 0x118   : > { %v1968_v22 = vld [vmem:[#allocation2 + $0x38] sm:$0xff]   ;;  %v1669_v23 = vcombine.low %v2081_v0, %v2086_v1  ;;  %v1969_v24 = vld [vmem:[#allocation2 + $0x30] sm:$0xff]   ;;  %v2017_v55 = vmov 0   ;;  %v1970_v25 = vld [vmem:[#allocation2 + $0x28] sm:$0xff]   ;;  %vm1230_vm1 = vcmask 523264   ;;  %v1670_v46 = vcombine.low %v2091_v2, %v2096_v3 }
 0x119   : > { %1826 = vmatprep.subr.bf16.mxu0 %v1968_v22  ;;  %1966 = vset.pattern.permute.xlu0 %v2017_v55  ;;  %v1971_v26 = vld [vmem:[#allocation2 + $0x20] sm:$0xff]   ;;  %v805_v0 = vld [vmem:[%s2549_s3 + $0x10] sm:$0xff]  ;;  %v804_v1 = vld [vmem:[%s2549_s3 + $0x8] sm:$0xff]  ;;  %v1671_v50 = vcombine.low %v2101_v4, %v2106_v5  ;;  %v1672_v5 = vcombine.low %v2111_v6, %v2116_v7  ;;  %v1673_v59 = vcombine.low %v2121_v8, %v2126_v9  ;;  %vm1520_vm2 = vcmask 130048  }
 0x11a   : > { %1842 = vmatprep.mubr.bf16.mxu0 %v1669_v23  ;;  %1827 = vmatpush3.bf16.msra.mxu0 %v1968_v22  ;;  %v803_v27 = vld [vmem:[%s2549_s3] sm:$0xff]  ;;  %v806_v28 = vld [vmem:[%s2549_s3 + $0x18] sm:$0xff]  ;;  %v808_v31 = vld [vmem:[%s2549_s3 + $0x28] sm:$0xff]  ;;  %v1674_v6 = vcombine.low %v2131_v10, %v2136_v11  ;;  %v1675_v8 = vcombine.low %v2141_v12, %v2146_v13  ;;  %v1676_v9 = vcombine.low %v2151_v14, %v2156_v15 }
 0x11b   : > { %1828 = vmatprep.subr.bf16.mxu0 %v1969_v24  ;;  %1967 = vset.pattern.permute.xlu1 %v2017_v55  ;;  %v1972_v29 = vld [vmem:[#allocation2 + $0x18] sm:$0xff]   ;;  %v807_v30 = vld [vmem:[%s2549_s3 + $0x20] sm:$0xff]  ;;  %v1973_v32 = vld [vmem:[#allocation2 + $0x10] sm:$0xff]  }
 0x11c   : > { %1030 = vperm.xlu0 %1966, %v803_v27   ;;  %1040 = vperm.xlu1 %1967, %v805_v0   ;;  %v2347_v33 = vld [vmem:[%s2551_s5 + $0x18] sm:$0xff]   ;;  %v2352_v34 = vld [vmem:[%s2551_s5 + $0x10] sm:$0xff]   ;;  %v2366_v38 = vld [vmem:[%s2551_s5 + $0x8] sm:$0xff]  }
 0x11d   : > { %v809_v35 = vld [vmem:[%s2549_s3 + $0x30] sm:$0xff]  ;;  %1922 = vmatprep.subr.bf16.mxu1 %v2347_v33  ;;  %v810_v36 = vld [vmem:[%s2549_s3 + $0x38] sm:$0xff]  ;;  %v1974_v39 = vld [vmem:[#allocation2 + $0x8] sm:$0xff]  }
 0x11e   : > { %1829 = vmatpush3.bf16.msra.mxu0 %v1969_v24  ;;  %1926 = vmatpush3.bf16.msra.mxu1 %v2347_v33  ;;  %v1980_v37 = vld [vmem:[#allocation2 + $0x10] sm:$0xff]   ;;  %v811_v53 = vld [vmem:[%s2549_s3 + $0x40] sm:$0xff]  ;;  %v812_v41 = vld [vmem:[%s2549_s3 + $0x48] sm:$0xff] }
 0x11f   : > { %1830 = vmatprep.subr.bf16.mxu0 %v1970_v25  ;;  %1923 = vmatprep.subr.bf16.mxu1 %v2352_v34  ;;  %v1975_v17 = vld [vmem:[#allocation2] sm:$0xff]   ;;  %v813_v43 = vld [vmem:[%s2549_s3 + $0x50] sm:$0xff]  ;;  %v814_v44 = vld [vmem:[%s2549_s3 + $0x58] sm:$0xff] }
 0x120   : > { %1035 = vperm.xlu0 %1966, %v804_v1   ;;  %1045 = vperm.xlu1 %1967, %v806_v28   ;;  %v1979_v42 = vld [vmem:[%s2551_s5] sm:$0xff]   ;;  %v1982_v45 = vld [vmem:[%s2550_s4 + $0x18] sm:$0xff]   ;;  %v816_v48 = vld [vmem:[%s2549_s3 + $0x68] sm:$0xff] }
 0x121   : > { %1870 = vmatprep.mubr.msk.bf16.mxu1 %vm1230_vm1, %v1980_v37  ;;  %v815_v47 = vld [vmem:[%s2549_s3 + $0x60] sm:$0xff]  ;;  %v1981_v49 = vld [vmem:[#allocation2 + $0x18] sm:$0xff]   ;;  %v1985_v2 = vld [vmem:[%s2550_s4 + $0x10] sm:$0xff]  }
 0x122   : > { %1831 = vmatpush3.bf16.msra.mxu0 %v1970_v25  ;;  %1927 = vmatpush3.bf16.msra.mxu1 %v2352_v34  ;;  %v1983_v52 = vld [vmem:[#allocation2 + $0x20] sm:$0xff]   ;;  %v817_v3 = vld [vmem:[%s2549_s3 + $0x70] sm:$0xff]  ;;  %v818_v56 = vld [vmem:[%s2549_s3 + $0x78] sm:$0xff] }
 0x123   : > { %1832 = vmatprep.subr.bf16.mxu0 %v1971_v26  ;;  %1924 = vmatprep.subr.bf16.mxu1 %v2366_v38  ;;  %v1988_v4 = vld [vmem:[%s2550_s4 + $0x8] sm:$0xff]   ;;  %v1986_v60 = vld [vmem:[#allocation2 + $0x30] sm:$0xff]   ;;  %v1987_v7 = vld [vmem:[#allocation2 + $0x38] sm:$0xff]  }
 0x124   : > { %1050 = vperm.xlu0 %1966, %v807_v30   ;;  %1055 = vperm.xlu1 %1967, %v808_v31   ;;  %v1984_v57 = vld [vmem:[#allocation2 + $0x28] sm:$0xff]   ;;  %v1989_v10 = vld [vmem:[%s2550_s4] sm:$0xff]  }
 0x125   : > { %v1990_v11 = vld [vmem:[#allocation2] sm:$0xff]   ;;  %v1991_v12 = vld [vmem:[#allocation2 + $0x8] sm:$0xff]  }
 0x126   : > { %1833 = vmatpush3.bf16.msra.mxu0 %v1971_v26  ;;  %1928 = vmatpush3.bf16.msra.mxu1 %v2366_v38 }
 0x127   : > { %1834 = vmatprep.subr.bf16.mxu0 %v1972_v29  ;;  %1925 = vmatprep.subr.bf16.mxu1 %v1979_v42 }
 0x128   : > { %1060 = vperm.xlu0 %1966, %v809_v35   ;;  %1065 = vperm.xlu1 %1967, %v810_v36  }
 0x12a   : > { %1835 = vmatpush3.bf16.msra.mxu0 %v1972_v29  ;;  %1929 = vmatpush3.bf16.msra.mxu1 %v1979_v42 }
 0x12b   : > { %1836 = vmatprep.subr.bf16.mxu0 %v1973_v32  ;;  %1882 = vmatprep.subr.bf16.mxu1 %v1982_v45 }
 0x12c   : > { %1070 = vperm.xlu0 %1966, %v811_v53   ;;  %1075 = vperm.xlu1 %1967, %v812_v41  }
 0x12d   : > { %1871 = vmatmul.mubr.msk.bf16.vlgmr.msra.gmra.mxu1 %vm1230_vm1, %v1981_v49 }
 0x12e   : > { %1837 = vmatpush3.bf16.msra.mxu0 %v1973_v32  ;;  %1883 = vmatpush3.bf16.msra.mxu1 %v1982_v45 }
 0x12f   : > { %1838 = vmatprep.subr.bf16.mxu0 %v1974_v39  ;;  %1874 = vmatprep.mubr.msk.bf16.mxu1 %vm1230_vm1, %v1983_v52 }
 0x130   : > { %1080 = vperm.xlu0 %1966, %v813_v43   ;;  %1085 = vperm.xlu1 %1967, %v814_v44  }
 0x131   : > { %1884 = vmatprep.subr.bf16.mxu1 %v1985_v2 }
 0x132   : > { %1839 = vmatpush3.bf16.msra.mxu0 %v1974_v39  ;;  %1885 = vmatpush3.bf16.msra.mxu1 %v1985_v2 }
 0x133   : > { %1840 = vmatprep.subr.bf16.mxu0 %v1975_v17  ;;  %1886 = vmatprep.subr.bf16.mxu1 %v1988_v4 }
 0x134   : > { %1090 = vperm.xlu0 %1966, %v815_v47   ;;  %1095 = vperm.xlu1 %1967, %v816_v48  }
 0x135   : > { %1875 = vmatmul.mubr.msk.bf16.gmra.mxu1 %vm1230_vm1, %v1984_v57 }
 0x136   : > { %1841 = vmatpush3.bf16.msra.mxu0 %v1975_v17  ;;  %1878 = vmatprep.mubr.msk.bf16.mxu1 %vm1230_vm1, %v1986_v60 }
 0x137   : > { %1858 = vmatprep.subr.bf16.mxu0 %v2347_v33  ;;  %1887 = vmatpush3.bf16.msra.mxu1 %v1988_v4 }
 0x138   : > { %1100 = vperm.xlu0 %1966, %v817_v3   ;;  %1105 = vperm.xlu1 %1967, %v818_v56  }
 0x139   : > { %1843 = vmatmul.mubr.bf16.vlgmr.msra.gmra.mxu0 %v1670_v46  ;;  %1888 = vmatprep.subr.bf16.mxu1 %v1989_v10 }
 0x13a   : > { %1846 = vmatprep.mubr.bf16.mxu0 %v1671_v50  ;;  %1859 = vmatpush3.bf16.msra.mxu0 %v2347_v33 }
 0x13b   : > { %1860 = vmatprep.subr.bf16.mxu0 %v2352_v34  ;;  %1889 = vmatpush3.bf16.msra.mxu1 %v1989_v10 }
 0x13d   : > { %1879 = vmatmul.mubr.msk.bf16.gmra.mxu1 %vm1230_vm1, %v1987_v7 }
 0x13e   : > { %1861 = vmatpush3.bf16.msra.mxu0 %v2352_v34 }
 0x13f   : > { %1862 = vmatprep.subr.bf16.mxu0 %v2366_v38 }
 0x141   : > { %1847 = vmatmul.mubr.bf16.gmra.mxu0 %v1672_v5 }
 0x142   : > { %1850 = vmatprep.mubr.bf16.mxu0 %v1673_v59  ;;  %1863 = vmatpush3.bf16.msra.mxu0 %v2366_v38 }
 0x143   : > { %1864 = vmatprep.subr.bf16.mxu0 %v1979_v42 }
 0x146   : > { %1865 = vmatpush3.bf16.msra.mxu0 %v1979_v42 }
 0x149   : > { %1851 = vmatmul.mubr.bf16.gmra.mxu0 %v1674_v6 }
 0x14a   : > { %1854 = vmatprep.mubr.bf16.mxu0 %v1675_v8 }
 0x151   : > { %1855 = vmatmul.mubr.bf16.gmra.mxu0 %v1676_v9 }
 0x152   : > { %1866 = vmatprep.mubr.msk.bf16.mxu0 %vm1230_vm1, %v1990_v11 }
 0x159   : > { %1867 = vmatmul.mubr.msk.bf16.vlgmr.msra.gmra.mxu0 %vm1230_vm1, %v1991_v12 }
 0x197   : > { %v1041_v13 = vpop.permute.xlu1 %1040  ;;  %v1031_v61 = vpop.permute.xlu0 %1030 }
 0x19b   : > { %v1046_v62 = vpop.permute.xlu1 %1045  ;;  %v1036_v63 = vpop.permute.xlu0 %1035 }
 0x19f   : > { %v1056_v16 = vpop.permute.xlu1 %1055  ;;  %v1051_v14 = vpop.permute.xlu0 %1050 }
 0x1a3   : > { %v1066_v58 = vpop.permute.xlu1 %1065  ;;  %v1061_v54 = vpop.permute.xlu0 %1060 }
 0x1a7   : > { %v1076_v26 = vpop.permute.xlu1 %1075  ;;  %v1071_v0 = vpop.permute.xlu0 %1070 }
 0x1ab   : > { %v1086_v33 = vpop.permute.xlu1 %1085  ;;  %v1081_v37 = vpop.permute.xlu0 %1080 }
 0x1af   : > { %v1096_v17 = vpop.permute.xlu1 %1095  ;;  %v1091_v45 = vpop.permute.xlu0 %1090 }
 0x1b3   : > { %v1106_v50 = vpop.permute.xlu1 %1105  ;;  %v1101_v3 = vpop.permute.xlu0 %1100 }
 0x1ed   : > { %v1872_v60 = vpop.f32.mrf.mxu1 }
 0x1ef   : > { %v1305_v6 = vpop.f32.mrf.mxu1 }
 0x1f1   : > { %v1873_v7 = vpop.f32.mrf.mxu1 }
 0x1f3   : > { %v1308_v8 = vpop.f32.mrf.mxu1 }
 0x1f5   : > { %v1876_v9 = vpop.f32.mrf.mxu1 }
 0x1f7   : > { %v1321_v10 = vpop.f32.mrf.mxu1 }
 0x1f9   : > { %v1844_v18 = vpop.f32.mrf.mxu0  ;;  %v1877_v11 = vpop.f32.mrf.mxu1 }
 0x1fa   : > { %v1110_v22 = vmul.f32 %v1844_v18, %v1041_v13 }
 0x1fb   : > { %v965_v15 = vpop.f32.mrf.mxu0  ;;  %v1324_v12 = vpop.f32.mrf.mxu1 }
 0x1fc   : > { %v1108_v40 = vmul.f32 %v1031_v61, %v965_v15  ;;  %v2453_v15 = vld [vmem:[%s2552_s6] ss:$0 sm:$0xff] }
 0x1fd   : > { %v1845_v51 = vpop.f32.mrf.mxu0  ;;  %v1880_v13 = vpop.f32.mrf.mxu1 }
 0x1fe   : > { %v1111_v19 = vmul.f32 %v1845_v51, %v1046_v62 }
 0x1ff   : > { %v968_v20 = vpop.f32.mrf.mxu0  ;;  %v1337_v61 = vpop.f32.mrf.mxu1 }
 0x200   : > { %v1109_v21 = vmul.f32 %v1036_v63, %v968_v20  ;;  %v1143_v55 = vpack.c.bf16 %v1111_v19, %v1110_v22 }
 0x201   : > { %v1848_v23 = vpop.f32.mrf.mxu0  ;;  %v2446_v63 = vpop.f32.mrf.mxu1 }
 0x202   : > { %v1142_v24 = vpack.c.bf16 %v1109_v21, %v1108_v40  ;;  %v1114_v31 = vmul.f32 %v1848_v23, %v1061_v54 }
 0x203   : > { %v981_v25 = vpop.f32.mrf.mxu0  ;;  %v2448_v18 = vpop.f32.mrf.mxu1 }
 0x204   : > { %1890 = vmatprep.mubr.msk.bf16.mxu1 %vm1230_vm1, %v1142_v24  ;;  %v1112_v29 = vmul.f32 %v1051_v14, %v981_v25 }
 0x205   : > { %v1849_v27 = vpop.f32.mrf.mxu0  ;;  %1891 = vmatmul.mubr.msk.bf16.vlgmr.msra.gmra.mxu1 %vm1230_vm1, %v1143_v55 }
 0x206   : > { %v1115_v1 = vmul.f32 %v1849_v27, %v1066_v58 }
 0x207   : > { %v984_v28 = vpop.f32.mrf.mxu0 }
 0x208   : > { %v1113_v30 = vmul.f32 %v1056_v16, %v984_v28  ;;  %v1145_v35 = vpack.c.bf16 %v1115_v1, %v1114_v31 }
 0x209   : > { %v1852_v32 = vpop.f32.mrf.mxu0 }
 0x20a   : > { %v1144_v34 = vpack.c.bf16 %v1113_v30, %v1112_v29  ;;  %v1118_v43 = vmul.f32 %v1852_v32, %v1081_v37 }
 0x20b   : > { %v997_v36 = vpop.f32.mrf.mxu0 }
 0x20c   : > { %1894 = vmatprep.mubr.msk.bf16.mxu1 %vm1230_vm1, %v1144_v34  ;;  %v1116_v41 = vmul.f32 %v1071_v0, %v997_v36 }
 0x20d   : > { %v1853_v38 = vpop.f32.mrf.mxu0  ;;  %1895 = vmatmul.mubr.msk.bf16.gmra.mxu1 %vm1230_vm1, %v1145_v35 }
 0x20e   : > { %v1119_v39 = vmul.f32 %v1853_v38, %v1086_v33 }
 0x20f   : > { %v1000_v53 = vpop.f32.mrf.mxu0 }
 0x210   : > { %v1117_v42 = vmul.f32 %v1076_v26, %v1000_v53  ;;  %v1147_v47 = vpack.c.bf16 %v1119_v39, %v1118_v43 }
 0x211   : > { %v1856_v44 = vpop.f32.mrf.mxu0 }
 0x212   : > { %v1146_v46 = vpack.c.bf16 %v1117_v42, %v1116_v41  ;;  %v1122_v5 = vmul.f32 %v1856_v44, %v1101_v3 }
 0x213   : > { %v1013_v48 = vpop.f32.mrf.mxu0 }
 0x214   : > { %1898 = vmatprep.mubr.msk.bf16.mxu1 %vm1230_vm1, %v1146_v46  ;;  %v1120_v56 = vmul.f32 %v1091_v45, %v1013_v48 }
 0x215   : > { %v1857_v49 = vpop.f32.mrf.mxu0  ;;  %1899 = vmatmul.mubr.msk.bf16.gmra.mxu1 %vm1230_vm1, %v1147_v47 }
 0x216   : > { %v1123_v52 = vmul.f32 %v1857_v49, %v1106_v50 }
 0x217   : > { %v1016_v2 = vpop.f32.mrf.mxu0 }
 0x218   : > { %v1121_v4 = vmul.f32 %v1096_v17, %v1016_v2  ;;  %v1149_v59 = vpack.c.bf16 %v1123_v52, %v1122_v5 }
 0x219   : > { %v1868_v62 = vpop.f32.mrf.mxu0 }
 0x21a   : > { %v1148_v57 = vpack.c.bf16 %v1121_v4, %v1120_v56 }
 0x21b   : > { %v1289_v16 = vpop.f32.mrf.mxu0 }
 0x21c   : > { %1902 = vmatprep.mubr.msk.bf16.mxu1 %vm1230_vm1, %v1148_v57 }
 0x21d   : > { %1903 = vmatmul.mubr.msk.bf16.gmra.mxu1 %vm1230_vm1, %v1149_v59  ;;  %v1869_v51 = vpop.f32.mrf.mxu0 }
 0x21f   : > { %v1292_v21 = vpop.f32.mrf.mxu0 }
 0x2c5   : > { %v1892_v14 = vpop.f32.mrf.mxu1 }
 0x2c6   : > { %v1443_v58 = vadd.f32 %v1892_v14, %v1868_v62 }
 0x2c7   : > { %v1434_v19 = vpop.f32.mrf.mxu1 }
 0x2c8   : > { %v1506_v20 = vadd.f32 %v2453_v15, %v1443_v58  ;;  %v1435_v54 = vadd.f32 %v1434_v19, %v1289_v16 }
 0x2c9   : > { %v1893_v40 = vpop.f32.mrf.mxu1 }
 0x2ca   : > { %1523 = vst.msk [vmem:[%s2553_s7 + $0x10] sm:$0xff] %vm1520_vm2, %v1506_v20  ;;  %v1504_v22 = vadd.f32 %v2453_v15, %v1435_v54  ;;  %v1446_v23 = vadd.f32 %v1893_v40, %v1869_v51 }
 0x2cb   : > { %v1437_v24 = vpop.f32.mrf.mxu1 }
 0x2cc   : > { %1521 = vst.msk [vmem:[%s2553_s7] sm:$0xff] %vm1520_vm2, %v1504_v22  ;;  %v1507_v55 = vadd.f32 %v2453_v15, %v1446_v23  ;;  %v1438_v25 = vadd.f32 %v1437_v24, %v1292_v21 }
 0x2cd   : > { %v1896_v26 = vpop.f32.mrf.mxu1 }
 0x2ce   : > { %1524 = vst.msk [vmem:[%s2553_s7 + $0x18] sm:$0xff] %vm1520_vm2, %v1507_v55  ;;  %v1505_v27 = vadd.f32 %v2453_v15, %v1438_v25  ;;  %v1459_v0 = vadd.f32 %v1896_v26, %v1872_v60 }
 0x2cf   : > { %v1450_v1 = vpop.f32.mrf.mxu1 }
 0x2d0   : > { %1522 = vst.msk [vmem:[%s2553_s7 + $0x8] sm:$0xff] %vm1520_vm2, %v1505_v27  ;;  %v1510_v28 = vadd.f32 %v2453_v15, %v1459_v0  ;;  %v1451_v29 = vadd.f32 %v1450_v1, %v1305_v6 }
 0x2d1   : > { %v1897_v30 = vpop.f32.mrf.mxu1 }
 0x2d2   : > { %1527 = vst.msk [vmem:[%s2553_s7 + $0x30] sm:$0xff] %vm1520_vm2, %v1510_v28  ;;  %v1508_v31 = vadd.f32 %v2453_v15, %v1451_v29  ;;  %v1462_v32 = vadd.f32 %v1897_v30, %v1873_v7 }
 0x2d3   : > { %v1453_v33 = vpop.f32.mrf.mxu1 }
 0x2d4   : > { %1525 = vst.msk [vmem:[%s2553_s7 + $0x20] sm:$0xff] %vm1520_vm2, %v1508_v31  ;;  %v1511_v34 = vadd.f32 %v2453_v15, %v1462_v32  ;;  %v1454_v35 = vadd.f32 %v1453_v33, %v1308_v8 }
 0x2d5   : > { %v1900_v36 = vpop.f32.mrf.mxu1 }
 0x2d6   : > { %1528 = vst.msk [vmem:[%s2553_s7 + $0x38] sm:$0xff] %vm1520_vm2, %v1511_v34  ;;  %v1509_v37 = vadd.f32 %v2453_v15, %v1454_v35  ;;  %v1475_v38 = vadd.f32 %v1900_v36, %v1876_v9 }
 0x2d7   : > { %v1466_v39 = vpop.f32.mrf.mxu1 }
 0x2d8   : > { %1526 = vst.msk [vmem:[%s2553_s7 + $0x28] sm:$0xff] %vm1520_vm2, %v1509_v37  ;;  %v1514_v53 = vadd.f32 %v2453_v15, %v1475_v38  ;;  %v1467_v17 = vadd.f32 %v1466_v39, %v1321_v10 }
 0x2d9   : > { %v1901_v41 = vpop.f32.mrf.mxu1 }
 0x2da   : > { %1531 = vst.msk [vmem:[%s2553_s7 + $0x50] sm:$0xff] %vm1520_vm2, %v1514_v53  ;;  %v1512_v42 = vadd.f32 %v2453_v15, %v1467_v17  ;;  %v1478_v43 = vadd.f32 %v1901_v41, %v1877_v11 }
 0x2db   : > { %v1469_v44 = vpop.f32.mrf.mxu1 }
 0x2dc   : > { %1529 = vst.msk [vmem:[%s2553_s7 + $0x40] sm:$0xff] %vm1520_vm2, %v1512_v42  ;;  %v1515_v45 = vadd.f32 %v2453_v15, %v1478_v43  ;;  %v1470_v46 = vadd.f32 %v1469_v44, %v1324_v12 }
 0x2dd   : > { %v1904_v47 = vpop.f32.mrf.mxu1 }
 0x2de   : > { %1532 = vst.msk [vmem:[%s2553_s7 + $0x58] sm:$0xff] %vm1520_vm2, %v1515_v45  ;;  %v1513_v48 = vadd.f32 %v2453_v15, %v1470_v46  ;;  %v1491_v49 = vadd.f32 %v1904_v47, %v1880_v13 }
 0x2df   : > { %v1482_v50 = vpop.f32.mrf.mxu1 }
 0x2e0   : > { %1530 = vst.msk [vmem:[%s2553_s7 + $0x48] sm:$0xff] %vm1520_vm2, %v1513_v48  ;;  %v1518_v52 = vadd.f32 %v2453_v15, %v1491_v49  ;;  %v1483_v2 = vadd.f32 %v1482_v50, %v1337_v61 }
 0x2e1   : > { %v1905_v3 = vpop.f32.mrf.mxu1 }
 0x2e2   : > { %1535 = vst.msk [vmem:[%s2553_s7 + $0x70] sm:$0xff] %vm1520_vm2, %v1518_v52  ;;  %v1516_v56 = vadd.f32 %v2453_v15, %v1483_v2  ;;  %v1494_v4 = vadd.f32 %v1905_v3, %v2446_v63 }
 0x2e3   : > { %v1485_v5 = vpop.f32.mrf.mxu1 }
 0x2e4   : > { %1533 = vst.msk [vmem:[%s2553_s7 + $0x60] sm:$0xff] %vm1520_vm2, %v1516_v56  ;;  %v1519_v57 = vadd.f32 %v2453_v15, %v1494_v4  ;;  %v1486_v59 = vadd.f32 %v1485_v5, %v2448_v18 }
 0x2e6   : > { %1536 = vst.msk [vmem:[%s2553_s7 + $0x78] sm:$0xff] %vm1520_vm2, %v1519_v57  ;;  %v1517_v60 = vadd.f32 %v2453_v15, %v1486_v59 }
 0x2e8   : > { %1534 = vst.msk [vmem:[%s2553_s7 + $0x68] sm:$0xff] %vm1520_vm2, %v1517_v60 }
 0x2e9 PF: > { %s17_s26 = sadd.s32 1, %s2014_s26   ;;  %s2554_s24 = smov %s2010_s25 }
 0x2ea   : > { %p14_p6 = scmp.ge.s32.totalorder %s17_s26, 4   ;;  %s2555_s25 = smov %s2557_s27 }
 0x2ec   :  { %16 = sbr.rel (!%p14_p6) target bundleno = 2 (0x2), region = 92 }

</bundles_post_ra>
